<compile_context>
chip_gen: v6e
topology: v6e:2x2x1
jax: 0.10.0
libtpu: 0.0.40
codegen_flags: <defaults>
</compile_context>

<pallas_src>
import functools
import math

import jax
import jax.numpy as jnp
from jax.experimental import pallas as pl
from jax.experimental.pallas import tpu as pltpu

LOG_SQRT_2PI = 0.5 * math.log(2.0 * math.pi)
OUT_W = 128    # lane-dense packed output width
HEAD_W = 128   # padded width of the fused (actor_action | critic_value) head


def _round_up(x, m):
    return (x + m - 1) // m * m


def ppo_kernel(x_ref, noise_ref, w1_ref, w2_ref, wh_ref, bias_ref, out_ref, *, A):
    """One batch tile of the fused PPO forward.

    Packed output slab layout (lanes of out_ref):
      [0:A)      mean
      [A:2A)     action
      2A         value
      2A+1       log_pi
      2A+2       entropy
      rest       zero padding
    """
    x = x_ref[...].astype(jnp.float32)

    b1 = bias_ref[0:1, :]              # (1, 2H)   fused layer-1 bias
    b2 = bias_ref[1:2, :]              # (1, 2H)   fused layer-2 bias
    bh = bias_ref[2:3, :]              # (1, HEAD_W) fused head bias (lane padded)
    std = bias_ref[3:4, 0:A]           # (1, A)    self.std parameter

    # ---- fused actor||critic FCBody (Linear -> tanh -> Linear -> tanh) ----
    h = jnp.tanh(jnp.dot(x, w1_ref[...], preferred_element_type=jnp.float32) + b1)
    phi = jnp.tanh(jnp.dot(h, w2_ref[...], preferred_element_type=jnp.float32) + b2)

    # ---- fused heads (block-diagonal, lane padded to 128) ----
    head = jnp.dot(phi, wh_ref[...], preferred_element_type=jnp.float32) + bh
    mean = jnp.tanh(head[:, 0:A])          # actor_action head, tanh-squashed
    value = head[:, A:A + 1]               # critic_value head (no tanh)

    # ---- Normal(mean, softplus(std)) ----
    # numerically stable softplus (std is learned and can grow)
    sigma = jnp.where(std > 20.0, std,
                      jnp.log1p(jnp.exp(jnp.minimum(std, 20.0))))   # (1, A)
    log_sigma = jnp.log(sigma)

    eps = noise_ref[...]                   # eps ~ N(0, 1), supplied by caller
    action = mean + sigma * eps            # reparameterised dist.sample()

    # dist.log_prob(action).sum(-1, keepdims=True).
    # Since action = mean + sigma*eps, z = (action - mean)/sigma == eps exactly
    # (removes the per-element divide; differs from torch only by rounding).
    log_pi = jnp.sum(-0.5 * eps * eps - log_sigma - LOG_SQRT_2PI,
                     axis=-1, keepdims=True)

    # entropy is batch-independent: reduce once, broadcast on store.
    ent_scalar = jnp.sum(0.5 + LOG_SQRT_2PI + log_sigma)
    entropy = jnp.zeros_like(log_pi) + ent_scalar

    # ---- pack everything into one lane-dense slab (single dense output DMA) ----
    out_ref[...] = jnp.zeros_like(out_ref)
    out_ref[:, 0:A] = mean
    out_ref[:, A:2 * A] = action
    out_ref[:, 2 * A:2 * A + 1] = value
    out_ref[:, 2 * A + 1:2 * A + 2] = log_pi
    out_ref[:, 2 * A + 2:2 * A + 3] = entropy


def pack_params(params):
    """Pre-pack (once, outside the kernel) the actor/critic weights into fused,
    lane-dense layouts. Linear weights are stored (in_features, out_features),
    so the kernel computes y = x @ W + b (== PyTorch x @ W.T + b)."""
    w1a, w1c = params["w1a"], params["w1c"]
    w2a, w2c = params["w2a"], params["w2c"]
    wact, wval = params["wact"], params["wval"]
    S, H = w1a.shape
    A = wact.shape[1]
    assert 2 * H == 128, "weight packing assumes hidden_units=(64, 64)"
    assert 2 * A + 3 <= OUT_W and A + 1 <= HEAD_W

    w1 = jnp.concatenate([w1a, w1c], axis=1)                         # (S, 2H)
    w2 = jnp.zeros((2 * H, 2 * H), jnp.float32)
    w2 = w2.at[:H, :H].set(w2a).at[H:, H:].set(w2c)                  # block-diag
    wh = jnp.zeros((2 * H, HEAD_W), jnp.float32)
    wh = wh.at[:H, :A].set(wact).at[H:, A:A + 1].set(wval)           # block-diag, padded

    b1 = jnp.concatenate([params["b1a"], params["b1c"]], axis=1)     # (1, 2H)
    b2 = jnp.concatenate([params["b2a"], params["b2c"]], axis=1)     # (1, 2H)
    bh = jnp.zeros((1, HEAD_W), jnp.float32)
    bh = bh.at[:, :A].set(params["bact"]).at[:, A:A + 1].set(params["bval"])
    std_row = jnp.zeros((1, 128), jnp.float32).at[:, :A].set(params["std"])
    bias = jnp.concatenate([b1, b2, bh, std_row], axis=0)            # (4, 128)

    return {"w1": w1, "w2": w2, "wh": wh, "bias": bias, "A": A, "S": S, "H": H}


def ppo_forward(state, packed, noise, *, tile_b=512):
    B, S = state.shape
    A = packed["A"]

    # Batch tile: large (512) for rollout-sized batches, rounded to sublane
    # multiples for tiny ones. Pad batch so the grid divides evenly.
    TB = min(tile_b, _round_up(B, 8))
    B_pad = _round_up(B, TB)
    if B_pad != B:
        state = jnp.pad(state, ((0, B_pad - B), (0, 0)))
        noise = jnp.pad(noise, ((0, B_pad - B), (0, 0)))

    def batch_spec(width):
        return pl.BlockSpec((TB, width), lambda i: (i, 0))

    def const_spec(arr):
        # full-array block, constant index map -> stays VMEM-resident across grid
        return pl.BlockSpec(arr.shape, lambda i: (0, 0))

    out = pl.pallas_call(
        functools.partial(ppo_kernel, A=A),
        out_shape=jax.ShapeDtypeStruct((B_pad, OUT_W), jnp.float32),
        grid_spec=pltpu.PrefetchScalarGridSpec(
            num_scalar_prefetch=0,
            grid=(B_pad // TB,),
            in_specs=[
                batch_spec(S),                # state tile
                batch_spec(A),                # noise tile
                const_spec(packed["w1"]),     # fused layer-1 weights
                const_spec(packed["w2"]),     # fused layer-2 weights (block-diag)
                const_spec(packed["wh"]),     # fused head weights (block-diag, padded)
                const_spec(packed["bias"]),   # packed biases + std
            ],
            out_specs=pl.BlockSpec((TB, OUT_W), lambda i: (i, 0)),
        ),
        compiler_params=pltpu.CompilerParams(
            dimension_semantics=("parallel",)),   # shards batch grid over TCs (v7x)
    )(state, noise, packed["w1"], packed["w2"], packed["wh"], packed["bias"])

    return {
        "actions": out[:B, A:2 * A],
        "values": out[:B, 2 * A:2 * A + 1],
        "log_pi": out[:B, 2 * A + 1:2 * A + 2],
        "entropy": out[:B, 2 * A + 2:2 * A + 3],
        "mean": out[:B, 0:A],
    }


def ppo_reference(state, params, noise):
    """Pure-JAX reference of the PyTorch forward (for sanity checking)."""
    hp = dict(precision=jax.lax.Precision.HIGHEST)
    h = jnp.tanh(jnp.dot(state, params["w1a"], **hp) + params["b1a"])
    phi_a = jnp.tanh(jnp.dot(h, params["w2a"], **hp) + params["b2a"])
    mean = jnp.tanh(jnp.dot(phi_a, params["wact"], **hp) + params["bact"])
    g = jnp.tanh(jnp.dot(state, params["w1c"], **hp) + params["b1c"])
    phi_v = jnp.tanh(jnp.dot(g, params["w2c"], **hp) + params["b2c"])
    value = jnp.dot(phi_v, params["wval"], **hp) + params["bval"]
    sigma = jax.nn.softplus(params["std"])
    action = mean + sigma * noise
    z = (action - mean) / sigma
    log_pi = jnp.sum(-0.5 * z * z - jnp.log(sigma) - LOG_SQRT_2PI,
                     axis=-1, keepdims=True)
    entropy = jnp.broadcast_to(
        jnp.sum(0.5 + LOG_SQRT_2PI + jnp.log(sigma), axis=-1, keepdims=True),
        log_pi.shape)
    return {"actions": action, "values": value, "log_pi": log_pi,
            "entropy": entropy, "mean": mean}


def init_params(key, state_dim, action_dim, hidden=(64, 64)):
    ks = jax.random.split(key, 6)

    def lin(k, fan_in, fan_out):
        # deterministic synthetic init (scaled normal); bias = 0
        w = jax.random.normal(k, (fan_in, fan_out), jnp.float32) / jnp.sqrt(fan_in)
        b = jnp.zeros((1, fan_out), jnp.float32)
        return w, b

    w1a, b1a = lin(ks[0], state_dim, hidden[0])
    w2a, b2a = lin(ks[1], hidden[0], hidden[0])
    wact, bact = lin(ks[2], hidden[0], action_dim)
    w1c, b1c = lin(ks[3], state_dim, hidden[1])
    w2c, b2c = lin(ks[4], hidden[1], hidden[1])
    wval, bval = lin(ks[5], hidden[1], 1)
    std = jnp.zeros((1, action_dim), jnp.float32)  # nn.Parameter(torch.zeros(action_dim))
    return dict(w1a=w1a, b1a=b1a, w2a=w2a, b2a=b2a, wact=wact, bact=bact,
                w1c=w1c, b1c=b1c, w2c=w2c, b2c=b2c, wval=wval, bval=bval,
                std=std)


if __name__ == "__main__":
    key = jax.random.PRNGKey(0)
    k_param, k_state, k_noise = jax.random.split(key, 3)

    B, STATE_DIM, ACTION_DIM = 8, 16, 4
    params = init_params(k_param, STATE_DIM, ACTION_DIM)
    state = jax.random.normal(k_state, (B, STATE_DIM), jnp.float32)
    # eps for the reparameterised Normal.sample(); sampling math is in-kernel
    noise = jax.random.normal(k_noise, (B, ACTION_DIM), jnp.float32)

    packed = pack_params(params)
    out = ppo_forward(state, packed, noise)
    jax.block_until_ready(out)

    # shape checks
    assert out["actions"].shape == (B, ACTION_DIM)
    assert out["values"].shape == (B, 1)
    assert out["log_pi"].shape == (B, 1)
    assert out["entropy"].shape == (B, 1)
    assert out["mean"].shape == (B, ACTION_DIM)

    # numeric sanity vs pure-JAX reference (loose tolerance: MXU vs XLA rounding)
    ref = ppo_reference(state, params, noise)
    for k in ("mean", "actions", "values", "log_pi", "entropy"):
        assert jnp.allclose(out[k], ref[k], atol=1e-2, rtol=1e-2), f"mismatch in {k}"

    print("KERNEL_OK")
</pallas_src>

<mosaic_0001>
module attributes {stable_mosaic.version = 11 : i64} {
  func.func @ppo_kernel(%arg0: i32, %arg1: memref<8x16xf32, #tpu.memory_space<vmem>>, %arg2: memref<8x4xf32, #tpu.memory_space<vmem>>, %arg3: memref<16x128xf32, #tpu.memory_space<vmem>>, %arg4: memref<128x128xf32, #tpu.memory_space<vmem>>, %arg5: memref<128x128xf32, #tpu.memory_space<vmem>>, %arg6: memref<4x128xf32, #tpu.memory_space<vmem>>, %arg7: memref<8x128xf32, #tpu.memory_space<vmem>>) attributes {dimension_semantics = [#tpu.dimension_semantics<parallel>], iteration_bounds = array<i64: 1>, scalar_prefetch = 0 : i64, scratch_operands = 0 : i64, tpu.core_type = #tpu.core_type<tc>, window_params = [{transform_indices = @transform_0, window_bounds = array<i64: 8, 16>}, {transform_indices = @transform_1, window_bounds = array<i64: 8, 4>}, {pipeline_mode = #tpu.pipeline_mode<synchronous>, transform_indices = @transform_2, window_bounds = array<i64: 16, 128>}, {pipeline_mode = #tpu.pipeline_mode<synchronous>, transform_indices = @transform_3, window_bounds = array<i64: 128, 128>}, {pipeline_mode = #tpu.pipeline_mode<synchronous>, transform_indices = @transform_4, window_bounds = array<i64: 128, 128>}, {pipeline_mode = #tpu.pipeline_mode<synchronous>, transform_indices = @transform_5, window_bounds = array<i64: 4, 128>}, {transform_indices = @transform_6, window_bounds = array<i64: 8, 128>}]} {
    %c0 = arith.constant 0 : index
    %c0_0 = arith.constant 0 : index
    %0 = vector.load %arg1[%c0, %c0_0] : memref<8x16xf32, #tpu.memory_space<vmem>>, vector<8x16xf32>
    %c0_1 = arith.constant 0 : index
    %c0_2 = arith.constant 0 : index
    %1 = vector.load %arg6[%c0_1, %c0_2] : memref<4x128xf32, #tpu.memory_space<vmem>>, vector<1x128xf32>
    %c1 = arith.constant 1 : index
    %c0_3 = arith.constant 0 : index
    %2 = vector.load %arg6[%c1, %c0_3] : memref<4x128xf32, #tpu.memory_space<vmem>>, vector<1x128xf32>
    %c2 = arith.constant 2 : index
    %c0_4 = arith.constant 0 : index
    %3 = vector.load %arg6[%c2, %c0_4] : memref<4x128xf32, #tpu.memory_space<vmem>>, vector<1x128xf32>
    %c3 = arith.constant 3 : index
    %c0_5 = arith.constant 0 : index
    %4 = vector.load %arg6[%c3, %c0_5] : memref<4x128xf32, #tpu.memory_space<vmem>>, vector<1x4xf32>
    %c0_6 = arith.constant 0 : index
    %c0_7 = arith.constant 0 : index
    %5 = vector.load %arg3[%c0_6, %c0_7] : memref<16x128xf32, #tpu.memory_space<vmem>>, vector<16x128xf32>
    %cst = arith.constant dense<0.000000e+00> : vector<8x128xf32>
    %6 = tpu.matmul %0, %5, %cst {dimension_numbers = #tpu.dot_dimension_numbers<[1], [0], [0], [1], [0, 0, 1, 1], [], []>} : vector<8x16xf32>, vector<16x128xf32>, vector<8x128xf32> -> vector<8x128xf32>
    %7 = vector.broadcast %1 : vector<1x128xf32> to vector<8x128xf32>
    %8 = arith.addf %6, %7 : vector<8x128xf32>
    %9 = math.tanh %8 : vector<8x128xf32>
    %c0_8 = arith.constant 0 : index
    %c0_9 = arith.constant 0 : index
    %10 = vector.load %arg4[%c0_8, %c0_9] : memref<128x128xf32, #tpu.memory_space<vmem>>, vector<128x128xf32>
    %cst_10 = arith.constant dense<0.000000e+00> : vector<8x128xf32>
    %11 = tpu.matmul %9, %10, %cst_10 {dimension_numbers = #tpu.dot_dimension_numbers<[1], [0], [0], [1], [0, 0, 1, 1], [], []>} : vector<8x128xf32>, vector<128x128xf32>, vector<8x128xf32> -> vector<8x128xf32>
    %12 = vector.broadcast %2 : vector<1x128xf32> to vector<8x128xf32>
    %13 = arith.addf %11, %12 : vector<8x128xf32>
    %14 = math.tanh %13 : vector<8x128xf32>
    %c0_11 = arith.constant 0 : index
    %c0_12 = arith.constant 0 : index
    %15 = vector.load %arg5[%c0_11, %c0_12] : memref<128x128xf32, #tpu.memory_space<vmem>>, vector<128x128xf32>
    %cst_13 = arith.constant dense<0.000000e+00> : vector<8x128xf32>
    %16 = tpu.matmul %14, %15, %cst_13 {dimension_numbers = #tpu.dot_dimension_numbers<[1], [0], [0], [1], [0, 0, 1, 1], [], []>} : vector<8x128xf32>, vector<128x128xf32>, vector<8x128xf32> -> vector<8x128xf32>
    %17 = vector.broadcast %3 : vector<1x128xf32> to vector<8x128xf32>
    %18 = arith.addf %16, %17 : vector<8x128xf32>
    %19 = vector.extract_strided_slice %18 {offsets = [0, 0], sizes = [8, 4], strides = [1, 1]} : vector<8x128xf32> to vector<8x4xf32>
    %20 = math.tanh %19 : vector<8x4xf32>
    %21 = vector.extract_strided_slice %18 {offsets = [0, 4], sizes = [8, 1], strides = [1, 1]} : vector<8x128xf32> to vector<8x1xf32>
    %cst_14 = arith.constant 2.000000e+01 : f32
    %22 = vector.broadcast %cst_14 : f32 to vector<1x4xf32>
    %23 = arith.cmpf ogt, %4, %22 : vector<1x4xf32>
    %cst_15 = arith.constant 2.000000e+01 : f32
    %24 = vector.broadcast %cst_15 : f32 to vector<1x4xf32>
    %25 = arith.minimumf %4, %24 : vector<1x4xf32>
    %26 = math.exp %25 : vector<1x4xf32>
    %27 = math.log1p %26 : vector<1x4xf32>
    %28 = arith.select %23, %4, %27 : vector<1x4xi1>, vector<1x4xf32>
    %29 = math.log %28 : vector<1x4xf32>
    %c0_16 = arith.constant 0 : index
    %c0_17 = arith.constant 0 : index
    %30 = vector.load %arg2[%c0_16, %c0_17] : memref<8x4xf32, #tpu.memory_space<vmem>>, vector<8x4xf32>
    %31 = vector.broadcast %28 : vector<1x4xf32> to vector<8x4xf32>
    %32 = arith.mulf %31, %30 : vector<8x4xf32>
    %33 = arith.addf %20, %32 : vector<8x4xf32>
    %cst_18 = arith.constant -5.000000e-01 : f32
    %34 = vector.broadcast %cst_18 : f32 to vector<8x4xf32>
    %35 = arith.mulf %34, %30 : vector<8x4xf32>
    %36 = arith.mulf %35, %30 : vector<8x4xf32>
    %37 = vector.broadcast %29 : vector<1x4xf32> to vector<8x4xf32>
    %38 = arith.subf %36, %37 : vector<8x4xf32>
    %cst_19 = arith.constant 0.918938517 : f32
    %39 = vector.broadcast %cst_19 : f32 to vector<8x4xf32>
    %40 = arith.subf %38, %39 : vector<8x4xf32>
    %cst_20 = arith.constant dense<0.000000e+00> : vector<8xf32>
    %41 = vector.multi_reduction <add>, %40, %cst_20 [1] : vector<8x4xf32> to vector<8xf32>
    %42 = vector.shape_cast %41 : vector<8xf32> to vector<8x1xf32>
    %cst_21 = arith.constant 1.41893852 : f32
    %43 = vector.broadcast %cst_21 : f32 to vector<1x4xf32>
    %44 = arith.addf %43, %29 : vector<1x4xf32>
    %45 = vector.shape_cast %44 : vector<1x4xf32> to vector<1x1x4xf32>
    %cst_22 = arith.constant dense<0.000000e+00> : vector<1xf32>
    %46 = vector.multi_reduction <add>, %45, %cst_22 [1, 2] : vector<1x1x4xf32> to vector<1xf32>
    %47 = vector.shape_cast %46 : vector<1xf32> to vector<1x1x1xf32>
    %48 = vector.extract %47[0, 0, 0] : f32 from vector<1x1x1xf32>
    %cst_23 = arith.constant 0.000000e+00 : f32
    %49 = vector.broadcast %cst_23 : f32 to vector<8x1xf32>
    %50 = vector.broadcast %48 : f32 to vector<8x1xf32>
    %51 = arith.addf %49, %50 : vector<8x1xf32>
    %cst_24 = arith.constant 0.000000e+00 : f32
    %52 = vector.broadcast %cst_24 : f32 to vector<8x128xf32>
    %c0_25 = arith.constant 0 : index
    %c0_26 = arith.constant 0 : index
    %53 = vector.load %arg7[%c0_25, %c0_26] : memref<8x128xf32, #tpu.memory_space<vmem>>, vector<8x128xf32>
    tpu.vector_store %arg7[%c0_25, %c0_26], %52 {strides = array<i32>} : memref<8x128xf32, #tpu.memory_space<vmem>>, vector<8x128xf32>,
    %c0_27 = arith.constant 0 : index
    %c0_28 = arith.constant 0 : index
    %54 = vector.load %arg7[%c0_27, %c0_28] : memref<8x128xf32, #tpu.memory_space<vmem>>, vector<8x4xf32>
    tpu.vector_store %arg7[%c0_27, %c0_28], %20 {strides = array<i32>} : memref<8x128xf32, #tpu.memory_space<vmem>>, vector<8x4xf32>,
    %c0_29 = arith.constant 0 : index
    %c4 = arith.constant 4 : index
    %55 = vector.load %arg7[%c0_29, %c4] : memref<8x128xf32, #tpu.memory_space<vmem>>, vector<8x4xf32>
    tpu.vector_store %arg7[%c0_29, %c4], %33 {strides = array<i32>} : memref<8x128xf32, #tpu.memory_space<vmem>>, vector<8x4xf32>,
    %c0_30 = arith.constant 0 : index
    %c8 = arith.constant 8 : index
    %56 = vector.load %arg7[%c0_30, %c8] : memref<8x128xf32, #tpu.memory_space<vmem>>, vector<8x1xf32>
    tpu.vector_store %arg7[%c0_30, %c8], %21 {strides = array<i32>} : memref<8x128xf32, #tpu.memory_space<vmem>>, vector<8x1xf32>,
    %c0_31 = arith.constant 0 : index
    %c9 = arith.constant 9 : index
    %57 = vector.load %arg7[%c0_31, %c9] : memref<8x128xf32, #tpu.memory_space<vmem>>, vector<8x1xf32>
    tpu.vector_store %arg7[%c0_31, %c9], %42 {strides = array<i32>} : memref<8x128xf32, #tpu.memory_space<vmem>>, vector<8x1xf32>,
    %c0_32 = arith.constant 0 : index
    %c10 = arith.constant 10 : index
    %58 = vector.load %arg7[%c0_32, %c10] : memref<8x128xf32, #tpu.memory_space<vmem>>, vector<8x1xf32>
    tpu.vector_store %arg7[%c0_32, %c10], %51 {strides = array<i32>} : memref<8x128xf32, #tpu.memory_space<vmem>>, vector<8x1xf32>,
    return
  }
  func.func @transform_0(%arg0: i32) -> (i32, i32) {
    %c0_i32 = arith.constant 0 : i32
    %c0_i32_0 = arith.constant 0 : i32
    return %arg0, %c0_i32 : i32, i32
  }
  func.func @transform_1(%arg0: i32) -> (i32, i32) {
    %c0_i32 = arith.constant 0 : i32
    %c0_i32_0 = arith.constant 0 : i32
    return %arg0, %c0_i32 : i32, i32
  }
  func.func @transform_2(%arg0: i32) -> (i32, i32) {
    %c0_i32 = arith.constant 0 : i32
    %c0_i32_0 = arith.constant 0 : i32
    %c0_i32_1 = arith.constant 0 : i32
    return %c0_i32, %c0_i32_0 : i32, i32
  }
  func.func @transform_3(%arg0: i32) -> (i32, i32) {
    %c0_i32 = arith.constant 0 : i32
    %c0_i32_0 = arith.constant 0 : i32
    %c0_i32_1 = arith.constant 0 : i32
    return %c0_i32, %c0_i32_0 : i32, i32
  }
  func.func @transform_4(%arg0: i32) -> (i32, i32) {
    %c0_i32 = arith.constant 0 : i32
    %c0_i32_0 = arith.constant 0 : i32
    %c0_i32_1 = arith.constant 0 : i32
    return %c0_i32, %c0_i32_0 : i32, i32
  }
  func.func @transform_5(%arg0: i32) -> (i32, i32) {
    %c0_i32 = arith.constant 0 : i32
    %c0_i32_0 = arith.constant 0 : i32
    %c0_i32_1 = arith.constant 0 : i32
    return %c0_i32, %c0_i32_0 : i32, i32
  }
  func.func @transform_6(%arg0: i32) -> (i32, i32) {
    %c0_i32 = arith.constant 0 : i32
    %c0_i32_0 = arith.constant 0 : i32
    return %arg0, %c0_i32 : i32, i32
  }
}

</mosaic_0001>

<bundles_post_ra>
// kernel: tpu_custom_call.1
= control target key start
LH: loop header
LB: loop body
LE: loop exit
PB: predicated region body
PF: predicated region fallthrough
CT: control target
= control target key end

     0   :  { %11 = vsyncpa [#allocation3], 0  ;;  %s761_s0 = inlined_call_operand.vmem [shape: f32[8,16], index: 0, kind: input, shape index: {}]   ;;  %s762_s1 = inlined_call_operand.vmem [shape: f32[8,4], index: 1, kind: input, shape index: {}]   ;;  %s763_s2 = inlined_call_operand.hbm [shape: f32[16,128], index: 2, kind: input, shape index: {}]   ;;  %s764_s3 = inlined_call_operand.hbm [shape: f32[128,128], index: 3, kind: input, shape index: {}]   ;;  %s765_s4 = inlined_call_operand.hbm [shape: f32[128,128], index: 4, kind: input, shape index: {}]   ;;  %s766_s5 = inlined_call_operand.vmem [shape: f32[4,128], index: 5, kind: input, shape index: {}]   ;;  %s767_s6 = inlined_call_operand.hbm [shape: f32[8,128], index: 6, kind: output, shape index: {}]  }
   0x1   :  { %12 = vsyncpa [#allocation6], 0 }
   0x2   :  { %13 = vsyncpa [#allocation4], 0  ;;  %s644_s21 = smov [#allocation5]   ;;  %s645_s23 = smov [#allocation2]  }
   0x3   :  { %s35_s22 = sshll.u32 %s644_s21, 4  ;;  %s23_s24 = sshll.u32 %s645_s23, 4  ;;  %s36_s22 = int_to_ptr.vmem [resolvable:$true] %s35_s22  ;;  %s24_s24 = int_to_ptr.vmem [resolvable:$true] %s23_s24 }
   0x4   :  { %s566_s25 = scalar_lea.vmem %s36_s22, 2048  ;;  %p571_p1 = scmp.lt.s32.totalorder %s36_s22, %s36_s22 }
   0x5   :  { %p567_p0 = scmp.ne.s32.totalorder %s36_s22, %s566_s25  ;;  %p572_p2 = scmp.lt.s32.totalorder %s566_s25, %s566_s25 }
   0x7   :  { %p573_p3 = por %p572_p2, %p571_p1 }
   0x9   :  { %p574_p4 = pnand %p573_p3, %p567_p0 }
   0xb   :  { %577 = shalt.err (!%p574_p4)
}
   0xc   :  { %s646_s26 = smov 128   ;;  %s647_s27 = smov 8  }
   0xd   :  { %41 = dma.hbm_to_vmem [thread:$0]  %s764_s3, 2048, %s36_s22, [#allocation6], %s646_s26, %s646_s26, %s647_s27  }
   0xe   :  { %s586_s30 = scalar_lea.vmem %s24_s24, 256  ;;  %p591_p6 = scmp.lt.s32.totalorder %s24_s24, %s24_s24 }
   0xf   :  { %p587_p5 = scmp.ne.s32.totalorder %s24_s24, %s586_s30  ;;  %p592_p7 = scmp.lt.s32.totalorder %s586_s30, %s586_s30 }
  0x11   :  { %p593_p8 = por %p592_p7, %p591_p6 }
  0x13   :  { %p594_p9 = pnand %p593_p8, %p587_p5 }
  0x15   :  { %597 = shalt.err (!%p594_p9)
}
  0x16   :  { %29 = dma.hbm_to_vmem [thread:$0]  %s763_s2, 256, %s24_s24, [#allocation3], %s646_s26, %s646_s26, %s647_s27  }
  0x17   :  { %s648_s9 = smov [#allocation7]  }
  0x18   :  { %s47_s10 = sshll.u32 %s648_s9, 4  ;;  %s48_s10 = int_to_ptr.vmem [resolvable:$true] %s47_s10 }
  0x19   :  { %s606_s11 = scalar_lea.vmem %s48_s10, 2048  ;;  %p611_p11 = scmp.lt.s32.totalorder %s48_s10, %s48_s10 }
  0x1a   :  { %p607_p10 = scmp.ne.s32.totalorder %s48_s10, %s606_s11  ;;  %p612_p12 = scmp.lt.s32.totalorder %s606_s11, %s606_s11 }
  0x1c   :  { %p613_p13 = por %p612_p12, %p611_p11 }
  0x1e   :  { %p614_p0 = pnand %p613_p13, %p607_p10 }
  0x20   :  { %617 = shalt.err (!%p614_p0)
}
  0x21   :  { %53 = dma.hbm_to_vmem [thread:$0]  %s765_s4, 2048, %s48_s10, [#allocation6], %s646_s26, %s646_s26, %s647_s27  }
  0x22   :  { %638 = dma.done.wait [#allocation3], 256  }
  0x23   :  { %639 = vsyncadd [#allocation3], 4294967040 }
  0x24   :  { %640 = dma.done.wait [#allocation6], 4096  }
  0x25   :  { %641 = vsyncadd [#allocation6], 4294963200  ;;  %v649_v0 = vmov 0.0   ;;  %vm650_vm0 = vmmov 0   ;;  %v71_v1 = vld [vmem:[#allocation2 + $0x8] sm:$0xff]  ;;  %v70_v2 = vld [vmem:[#allocation2] sm:$0xff]  ;;  %v350_v63 = vlaneseq }
  0x26   :  { %458 = vmatprep.subr.mxu0 %v649_v0  ;;  %382 = vst [vmem:[#allocation8] sm:$0xff] %v649_v0  ;;  %462 = vmatprep.mubr.msk.f32.mxu0 %vm650_vm0, %v649_v0  ;;  %v65_v3 = vld [vmem:[%s761_s0] sm:$0xff]  ;;  %vm76_vm1 = vcmask 130048   ;;  %v166_v4 = vld [vmem:[#allocation5 + $0x78] sm:$0xff]  ;;  %v164_v6 = vld [vmem:[#allocation5 + $0x68] sm:$0xff]  ;;  %vm369_vm4 = vcmask 24576  }
  0x27   :  { %465 = vmatprep.subr.mxu1 %v649_v0  ;;  %497 = vmatprep.mubr.msk.f32.mxu1 %vm650_vm0, %v649_v0  ;;  %v165_v5 = vld [vmem:[#allocation5 + $0x70] sm:$0xff]  ;;  %v163_v7 = vld [vmem:[#allocation5 + $0x60] sm:$0xff]  ;;  %v162_v8 = vld [vmem:[#allocation5 + $0x58] sm:$0xff]  ;;  %vm364_vm5 = vcmask 31744   ;;  %s651_s21 = smov 4   ;;  %vm388_vm6 = vcmask 64544  }
  0x28   :  { %459 = vmatpush3.msra.mxu0 %v71_v1  ;;  %466 = vmatpush3.msra.mxu1 %v166_v4  ;;  %v161_v9 = vld [vmem:[#allocation5 + $0x50] sm:$0xff]  ;;  %v160_v10 = vld [vmem:[#allocation5 + $0x48] sm:$0xff]  ;;  %v159_v11 = vld [vmem:[#allocation5 + $0x40] sm:$0xff]  ;;  %vm394_vm7 = vcmask 72768   ;;  %s652_s22 = smov [#allocation8]   ;;  %vm396_vm8 = vcmask 80968  }
  0x29   :  { %460 = vmatprep.subr.mxu0 %v649_v0  ;;  %467 = vmatprep.subr.mxu1 %v649_v0  ;;  %v158_v12 = vld [vmem:[#allocation5 + $0x38] sm:$0xff]  ;;  %v157_v13 = vld [vmem:[#allocation5 + $0x30] sm:$0xff]  ;;  %v156_v14 = vld [vmem:[#allocation5 + $0x28] sm:$0xff]  ;;  %s406_s23 = sshll.u32 %s652_s22, 4  ;;  %vm398_vm9 = vcmask 89168   ;;  %s407_s23 = int_to_ptr.vmem [resolvable:$true] %s406_s23 }
  0x2a   :  { %461 = vmatpush3.msra.mxu0 %v70_v2  ;;  %468 = vmatpush3.msra.mxu1 %v165_v5  ;;  %v155_v15 = vld [vmem:[#allocation5 + $0x20] sm:$0xff]  ;;  %v154_v16 = vld [vmem:[#allocation5 + $0x18] sm:$0xff]  ;;  %v153_v17 = vld [vmem:[#allocation5 + $0x10] sm:$0xff]  ;;  %p623_p2 = scmp.lt.s32.totalorder %s407_s23, %s407_s23 }
  0x2b   :  { %463 = vmatmul.mubr.msk.f32.vlgmr.msra.gmra.mxu0 %vm76_vm1, %v65_v3  ;;  %469 = vmatprep.subr.mxu1 %v649_v0  ;;  %v152_v18 = vld [vmem:[#allocation5 + $0x8] sm:$0xff]  ;;  %v151_v19 = vld [vmem:[#allocation5] sm:$0xff]  ;;  %v257_v20 = vld [vmem:[#allocation7 + $0x78] sm:$0xff] }
  0x2c   :  { %500 = vmatprep.subr.mxu0 %v649_v0  ;;  %470 = vmatpush3.msra.mxu1 %v164_v6  ;;  %v256_v21 = vld [vmem:[#allocation7 + $0x70] sm:$0xff]  ;;  %v255_v22 = vld [vmem:[#allocation7 + $0x68] sm:$0xff]  ;;  %v254_v23 = vld [vmem:[#allocation7 + $0x60] sm:$0xff] }
  0x2d   :  { %532 = vmatprep.mubr.msk.f32.mxu0 %vm650_vm0, %v649_v0  ;;  %471 = vmatprep.subr.mxu1 %v649_v0  ;;  %v253_v24 = vld [vmem:[#allocation7 + $0x58] sm:$0xff]  ;;  %v252_v25 = vld [vmem:[#allocation7 + $0x50] sm:$0xff]  ;;  %v251_v26 = vld [vmem:[#allocation7 + $0x48] sm:$0xff] }
  0x2e   :  { %472 = vmatpush3.msra.mxu1 %v163_v7  ;;  %501 = vmatpush3.msra.mxu0 %v257_v20  ;;  %v416_v27 = vld [vmem:[%s766_s5] ss:$0 sm:$0xff]  ;;  %v250_v32 = vld [vmem:[#allocation7 + $0x40] sm:$0xff]  ;;  %v249_v33 = vld [vmem:[#allocation7 + $0x38] sm:$0xff] }
  0x2f   :  { %473 = vmatprep.subr.mxu1 %v649_v0  ;;  %502 = vmatprep.subr.mxu0 %v649_v0  ;;  %v248_v34 = vld [vmem:[#allocation7 + $0x30] sm:$0xff]  ;;  %v247_v35 = vld [vmem:[#allocation7 + $0x28] sm:$0xff]  ;;  %v246_v36 = vld [vmem:[#allocation7 + $0x20] sm:$0xff] }
  0x30   :  { %474 = vmatpush3.msra.mxu1 %v162_v8  ;;  %503 = vmatpush3.msra.mxu0 %v256_v21  ;;  %v245_v37 = vld [vmem:[#allocation7 + $0x18] sm:$0xff]  ;;  %v244_v38 = vld [vmem:[#allocation7 + $0x10] sm:$0xff]  ;;  %v243_v39 = vld [vmem:[#allocation7 + $0x8] sm:$0xff] }
  0x31   :  { %475 = vmatprep.subr.mxu1 %v649_v0  ;;  %504 = vmatprep.subr.mxu0 %v649_v0  ;;  %v242_v40 = vld [vmem:[#allocation7] sm:$0xff]  ;;  %v69_v41 = vld [vmem:[%s766_s5 + $0x3] sm:$0x1]  ;;  %v418_v58 = vld [vmem:[%s766_s5 + $0x1] ss:$0 sm:$0xff] }
  0x32   :  { %476 = vmatpush3.msra.mxu1 %v161_v9  ;;  %505 = vmatpush3.msra.mxu0 %v255_v22  ;;  %v334_v42 = vmin.f32 %v69_v41, 20.0  ;;  %vm333_vm3 = vcmp.gt.f32.partialorder %v69_v41, 20.0  ;;  %v349_v1 = vld [vmem:[%s762_s1] sm:$0xff] }
  0x33   :  { %477 = vmatprep.subr.mxu1 %v649_v0  ;;  %506 = vmatprep.subr.mxu0 %v649_v0  ;;  %v356_v3 = vmul.f32 -0.5, %v349_v1 }
  0x34   :  { %478 = vmatpush3.msra.mxu1 %v160_v10  ;;  %507 = vmatpush3.msra.mxu0 %v254_v23  ;;  %v335_v43 = vmul.f32 1.442695, %v334_v42 }
  0x35   :  { %479 = vmatprep.subr.mxu1 %v649_v0  ;;  %508 = vmatprep.subr.mxu0 %v649_v0  ;;  %v357_v4 = vmul.f32 %v356_v3, %v349_v1 }
  0x36   :  { %480 = vmatpush3.msra.mxu1 %v159_v11  ;;  %509 = vmatpush3.msra.mxu0 %v253_v24 }
  0x37   :  { %481 = vmatprep.subr.mxu1 %v649_v0  ;;  %510 = vmatprep.subr.mxu0 %v649_v0 }
  0x38   :  { %482 = vmatpush3.msra.mxu1 %v158_v12  ;;  %511 = vmatpush3.msra.mxu0 %v252_v25 }
  0x39   :  { %483 = vmatprep.subr.mxu1 %v649_v0  ;;  %512 = vmatprep.subr.mxu0 %v649_v0 }
  0x3a   :  { %484 = vmatpush3.msra.mxu1 %v157_v13  ;;  %513 = vmatpush3.msra.mxu0 %v251_v26 }
  0x3b   :  { %485 = vmatprep.subr.mxu1 %v649_v0  ;;  %514 = vmatprep.subr.mxu0 %v649_v0 }
  0x3c   :  { %486 = vmatpush3.msra.mxu1 %v156_v14  ;;  %515 = vmatpush3.msra.mxu0 %v250_v32 }
  0x3d   :  { %487 = vmatprep.subr.mxu1 %v649_v0  ;;  %516 = vmatprep.subr.mxu0 %v649_v0 }
  0x3e   :  { %488 = vmatpush3.msra.mxu1 %v155_v15  ;;  %517 = vmatpush3.msra.mxu0 %v249_v33 }
  0x3f   :  { %489 = vmatprep.subr.mxu1 %v649_v0  ;;  %518 = vmatprep.subr.mxu0 %v649_v0 }
  0x40   :  { %490 = vmatpush3.msra.mxu1 %v154_v16  ;;  %519 = vmatpush3.msra.mxu0 %v248_v34 }
  0x41   :  { %491 = vmatprep.subr.mxu1 %v649_v0  ;;  %520 = vmatprep.subr.mxu0 %v649_v0 }
  0x42   :  { %492 = vmatpush3.msra.mxu1 %v153_v17  ;;  %521 = vmatpush3.msra.mxu0 %v247_v35 }
  0x43   :  { %493 = vmatprep.subr.mxu1 %v649_v0  ;;  %522 = vmatprep.subr.mxu0 %v649_v0 }
  0x44   :  { %494 = vmatpush3.msra.mxu1 %v152_v18  ;;  %523 = vmatpush3.msra.mxu0 %v246_v36  ;;  %v419_v18 = vld [vmem:[%s766_s5 + $0x2] ss:$0 sm:$0xff]  ;;  %s618_s5 = scalar_lea.vmem %s407_s23, 128 }
  0x45   :  { %495 = vmatprep.subr.mxu1 %v649_v0  ;;  %524 = vmatprep.subr.mxu0 %v649_v0  ;;  %p619_p1 = scmp.ne.s32.totalorder %s407_s23, %s618_s5  ;;  %p624_p3 = scmp.lt.s32.totalorder %s618_s5, %s618_s5 }
  0x46   :  { %496 = vmatpush3.msra.mxu1 %v151_v19  ;;  %525 = vmatpush3.msra.mxu0 %v245_v37 }
  0x47   :  { %526 = vmatprep.subr.mxu0 %v649_v0  ;;  %p625_p4 = por %p624_p3, %p623_p2 }
  0x48   :  { %527 = vmatpush3.msra.mxu0 %v244_v38 }
  0x49   :  { %528 = vmatprep.subr.mxu0 %v649_v0  ;;  %p626_p5 = pnand %p625_p4, %p619_p1 }
  0x4a   :  { %529 = vmatpush3.msra.mxu0 %v243_v39 }
  0x4b   :  { %530 = vmatprep.subr.mxu0 %v649_v0  ;;  %v351_v0 = vshrl.u32 %v350_v63, 7 }
  0x4c   :  { %531 = vmatpush3.msra.mxu0 %v242_v40 }
  0x4d   :  { %v352_v2 = vsub.s32 0, %v351_v0 }
  0xeb   :  { %v146_v28 = vpop.f32.mrf.mxu0 }
  0xec   :  { %v147_v29 = vadd.f32 %v416_v27, %v146_v28 }
  0xed   :  { %v464_v30 = vpop.f32.mrf.mxu0 }
  0xee   :  { %546 = vtanh.f32 %v147_v29 }
  0xef   :  { %548 = vpow2.f32 %v335_v43 }
  0xfb   :  { %v547_v31 = vpop.eup %546 }
  0xfc   :  { %498 = vmatmul.mubr.f32.vlgmr.msra.gmra.mxu1 %v547_v31  ;;  %v549_v44 = vpop.eup %548 }
  0xfd   :  { %v337_v45 = vadd.f32 1.0, %v549_v44  ;;  %v340_v46 = vmul.f32 -0.5, %v549_v44  ;;  %v343_v48 = vand.u32 2147483647, %v549_v44 }
  0xff   :  { %550 = vlog2.f32 %v337_v45  ;;  %v341_v47 = vadd.f32 1.0, %v340_v46  ;;  %vm344_vm2 = vcmp.lt.f32.partialorder %v343_v48, 0.0004427343 }
 0x101   :  { %v342_v49 = vmul.f32 %v549_v44, %v341_v47 }
 0x10c   :  { %v551_v50 = vpop.eup %550 }
 0x10d   :  { %v339_v51 = vmul.f32 0.6931472, %v551_v50 }
 0x10f   :  { %v345_v52 = vsel %vm344_vm2, %v342_v49, %v339_v51 }
 0x110   :  { %v346_v53 = vsel %vm333_vm3, %v69_v41, %v345_v52 }
 0x111   :  { %552 = vlog2.f32 %v346_v53  ;;  %v353_v9 = vrot.slane %v346_v53, %v352_v2 }
 0x113   :  { %v354_v10 = vmul.f32 %v353_v9, %v349_v1 }
 0x11e   :  { %v553_v54 = vpop.eup %552 }
 0x11f   :  { %v348_v55 = vmul.f32 0.6931472, %v553_v54 }
 0x121   :  { %v368_v56 = vadd.f32 1.4189385, %v348_v55  ;;  %v361_v5 = vrot.slane %v348_v55, %v352_v2 }
 0x123   :  { %v370_v57 = vsel %vm369_vm4, %v368_v56, 0.0  ;;  %v362_v6 = vsub.f32 %v357_v4, %v361_v5 }
 0x124   :  { %371 = vadd.xlane.f32.xlu0 %v370_v57 }
 0x125   :  { %v420_v7 = vadd.f32 -0.9189385, %v362_v6 }
 0x127   :  { %v365_v8 = vsel %vm364_vm5, %v420_v7, 0.0 }
 0x128   :  { %366 = vadd.xlane.f32.xlu0 %v365_v8 }
 0x1ad   :  { %v372_v11 = vpop.xlane.xlu0 %371 }
 0x1ae   :  { %v373_v12 = vrot.slane %v372_v11, 4 }
 0x1b0   :  { %v374_v13 = vadd.f32 %v373_v12, %v372_v11 }
 0x1b1   :  { %v367_v25 = vpop.xlane.xlu0 %366 }
 0x1b2   :  { %v375_v14 = vrot.slane %v374_v13, 2 }
 0x1b4   :  { %v376_v15 = vadd.f32 %v375_v14, %v374_v13 }
 0x1b6   :  { %v377_v16 = vrot.slane %v376_v15, 1 }
 0x1b8   :  { %v378_v17 = vadd.f32 %v377_v16, %v376_v15 }
 0x1ba   :  { %535 = vpush %v378_v17 }
 0x1bc   :  { %v237_v59 = vpop.f32.mrf.mxu1 }
 0x1bd   :  { %v238_v60 = vadd.f32 %v418_v58, %v237_v59 }
 0x1be   :  { %v499_v61 = vpop.f32.mrf.mxu1 }
 0x1bf   :  { %554 = vtanh.f32 %v238_v60 }
 0x1cc   :  { %v555_v62 = vpop.eup %554 }
 0x1cd   :  { %533 = vmatmul.mubr.f32.vlgmr.msra.gmra.mxu0 %v555_v62 }
 0x1eb   :  { %s536_s24 = spop %535 }
 0x1ec   :  { %v380_v27 = vstv %s536_s24 }
 0x28d   :  { %v328_v19 = vpop.f32.mrf.mxu0 }
 0x28e   :  { %v329_v20 = vadd.f32 %v419_v18, %v328_v19 }
 0x28f   :  { %v534_v21 = vpop.f32.mrf.mxu0 }
 0x290   :  { %556 = vtanh.f32 %v329_v20 }
 0x29d   :  { %v557_v22 = vpop.eup %556 }
 0x29e   :  { %383 = vst.msk [vmem:[#allocation8] sm:$0xff] %vm364_vm5, %v557_v22  ;;  %v355_v23 = vadd.f32 %v557_v22, %v354_v10 }
 0x2a0   :  { %385 = vrot.lane.b32.xlu1 %v355_v23, %s651_s21 }
 0x2a4   :  { %391 = vrot.lane.b32.xlu1 %v329_v20, %s651_s21 }
 0x312   :  { %v386_v24 = vpop.permute.xlu1 %385 }
 0x313   :  { %389 = vst.msk [vmem:[#allocation8] sm:$0xff] %vm388_vm6, %v386_v24 }
 0x316   :  { %v392_v26 = vpop.permute.xlu1 %391 }
 0x317   :  { %395 = vst.msk [vmem:[#allocation8] sm:$0xff] %vm394_vm7, %v392_v26 }
 0x318   :  { %397 = vst.msk [vmem:[#allocation8] sm:$0xff] %vm396_vm8, %v367_v25 }
 0x319   :  { %399 = vst.msk [vmem:[#allocation8] sm:$0xff] %vm398_vm9, %v380_v27 }
 0x31a   :  { %629 = shalt.err (!%p626_p5)
}
 0x31b   :  { %409 = dma.vmem_to_hbm [thread:$0]  %s407_s23, 128, %s767_s6, [#allocation4]  }
 0x31c   :  { %642 = dma.done.wait [#allocation4], 128  }
 0x31d   :  { %643 = vsyncadd [#allocation4], 4294967168 }
 0x31e   :  { %413 = vsyncpa [#allocation3], 1 }
 0x31f   :  { %414 = vsyncpa [#allocation6], 1 }
 0x320   :  { %415 = vsyncpa [#allocation4], 1 }

</bundles_post_ra>
